<compile_context>
chip_gen: v6e
topology: v6e:2x2x1
jax: 0.10.0
libtpu: 0.0.40
codegen_flags: <defaults>
</compile_context>

<pallas_src>
import jax
import jax.numpy as jnp
from jax.experimental import pallas as pl
from jax.experimental.pallas import tpu as pltpu


# ----------------------------------------------------------------------------
# Pallas kernel: fused 2-layer MLP forward  out = relu(x @ W1 + b1) @ W2 + b2
# x / W1 / W2 are bf16 (MXU inputs); accumulation, bias, ReLU in f32.
# ----------------------------------------------------------------------------
def _mlp_kernel(x_ref, w1_ref, b1_ref, w2_ref, b2_ref, o_ref):
    x = x_ref[...]                                     # (tb, H)  bf16
    w1 = w1_ref[...]                                   # (H, H)   bf16
    w2 = w2_ref[...]                                   # (H, H)   bf16
    b1 = b1_ref[...]                                   # (1, H)   f32
    b2 = b2_ref[...]                                   # (1, H)   f32

    h = jnp.dot(x, w1, preferred_element_type=jnp.float32) + b1
    h = jnp.maximum(h, 0.0)                            # ReLU in f32 (VPU slot)
    h = h.astype(jnp.bfloat16)                         # bf16 into 2nd MXU pass
    out = jnp.dot(h, w2, preferred_element_type=jnp.float32) + b2
    o_ref[...] = out.astype(o_ref.dtype)


def _round_up(x, m):
    return (x + m - 1) // m * m


def _default_tile_b():
    # v5e MXU is 4x128x128 -> 128-row tiles; v6e/v7x MXU is 2x256x256 -> 256.
    try:
        kind = jax.devices()[0].device_kind.lower()
    except Exception:
        kind = ""
    return 128 if "v5" in kind else 256


def mlp_forward_pallas(x, w1, b1, w2, b2, *, tile_b=None):
    """Fused MLP forward. x: [B, H], weights [H, H], biases [1, H]."""
    B, H = x.shape
    out_dtype = x.dtype

    if tile_b is None:
        tile_b = _default_tile_b()
    # Shrink (sublane-aligned) for tiny batches instead of a huge padded tile;
    # a partial trailing block is handled by Pallas' masked writeback and is
    # correct here because every output row depends only on its own x row.
    tile_b = max(8, min(tile_b, _round_up(B, 8)))
    grid = (pl.cdiv(B, tile_b),)

    # bf16 MXU operands; biases stay f32 (folded into the f32 accumulator).
    xb = x.astype(jnp.bfloat16)
    w1b = w1.astype(jnp.bfloat16)
    w2b = w2.astype(jnp.bfloat16)
    b1f = b1.astype(jnp.float32)
    b2f = b2.astype(jnp.float32)

    out_isz = jnp.dtype(out_dtype).itemsize
    bytes_accessed = int(
        B * H * 2                      # x (bf16 in)
        + B * H * out_isz              # out
        + 2 * H * H * 2                # W1 + W2 (bf16)
        + 2 * H * 4                    # biases (f32)
    )
    cost = pl.CostEstimate(flops=4 * B * H * H, transcendentals=0,
                           bytes_accessed=bytes_accessed)

    # VMEM budget: resident weights (ideally single-buffered) + double-buffered
    # x/out tiles + headroom.  Clamp to 64 MiB so the limit is valid on v7x.
    # TODO(synk): for H >~ 2048 the fully-resident-weight strategy stops
    # fitting v7x's 64 MiB VMEM; that regime needs an N/K-tiled grid with an
    # f32 VMEM accumulator instead of resident W1/W2.
    weight_bytes = 2 * H * H * 2
    act_bytes = 2 * tile_b * H * 2 * 2 + 2 * tile_b * H * out_isz
    vmem_limit = int(min(max(2 * weight_bytes + act_bytes + (8 << 20), 32 << 20),
                         64 << 20))

    def _build(single_buffer_weights):
        def w_spec():
            if single_buffer_weights:
                # Constant index_map -> no double buffer needed for weights.
                return pl.BlockSpec((H, H), lambda i: (0, 0),
                                    pipeline_mode=pl.Buffered(1))
            return pl.BlockSpec((H, H), lambda i: (0, 0))

        return pl.pallas_call(
            _mlp_kernel,
            out_shape=jax.ShapeDtypeStruct((B, H), out_dtype),
            grid_spec=pltpu.PrefetchScalarGridSpec(
                num_scalar_prefetch=0,
                grid=grid,
                in_specs=[
                    pl.BlockSpec((tile_b, H), lambda i: (i, 0)),   # x tile
                    w_spec(),                                      # W1 resident
                    pl.BlockSpec((1, H), lambda i: (0, 0)),        # b1
                    w_spec(),                                      # W2 resident
                    pl.BlockSpec((1, H), lambda i: (0, 0)),        # b2
                ],
                out_specs=pl.BlockSpec((tile_b, H), lambda i: (i, 0)),
            ),
            compiler_params=pltpu.CompilerParams(
                dimension_semantics=("parallel",),
                vmem_limit_bytes=vmem_limit,
            ),
            cost_estimate=cost,
        )

    try:
        return _build(True)(xb, w1b, b1f, w2b, b2f)
    except Exception:
        # Fallback if this Pallas build rejects Buffered(1) weight specs.
        return _build(False)(xb, w1b, b1f, w2b, b2f)


# ----------------------------------------------------------------------------
# DDP wrapper: exact semantics of the PyTorch module (pure delegation)
# ----------------------------------------------------------------------------
class DDP:
    """forward(*args) -> self.net(*args)  — no compute of its own."""

    def __init__(self, net):
        self.net = net

    def __call__(self, *args):
        return self.net(*args)


class SyntheticMLPNet:
    """A representative `net` for DDP to wrap; hot path runs in Pallas."""

    def __init__(self, hidden, key):
        k1, k2, k3, k4 = jax.random.split(key, 4)
        scale = 1.0 / jnp.sqrt(hidden)
        self.w1 = jax.random.normal(k1, (hidden, hidden), jnp.float32) * scale
        self.b1 = jax.random.normal(k2, (1, hidden), jnp.float32) * 0.01
        self.w2 = jax.random.normal(k3, (hidden, hidden), jnp.float32) * scale
        self.b2 = jax.random.normal(k4, (1, hidden), jnp.float32) * 0.01

    def __call__(self, x):
        return mlp_forward_pallas(x, self.w1, self.b1, self.w2, self.b2)


if __name__ == "__main__":
    key = jax.random.PRNGKey(0)
    k_x, k_net = jax.random.split(key)

    batch, hidden = 16, 256
    x = jax.random.normal(k_x, (batch, hidden), jnp.float32)

    net = SyntheticMLPNet(hidden, k_net)
    model = DDP(net)                      # DDP is a pure pass-through wrapper

    out = model(x)
    out = jax.block_until_ready(out)

    # Reference check (plain JAX) matching the kernel's bf16-input /
    # f32-accumulate numerics.
    xq = x.astype(jnp.bfloat16).astype(jnp.float32)
    w1q = net.w1.astype(jnp.bfloat16).astype(jnp.float32)
    w2q = net.w2.astype(jnp.bfloat16).astype(jnp.float32)
    h = jnp.maximum(xq @ w1q + net.b1, 0.0)
    h = h.astype(jnp.bfloat16).astype(jnp.float32)
    ref = h @ w2q + net.b2

    assert out.shape == (batch, hidden)
    assert jnp.allclose(out, ref, atol=5e-3, rtol=5e-3)

    print("KERNEL_OK")
</pallas_src>

<mosaic_0001>
module attributes {stable_mosaic.version = 11 : i64} {
  func.func @_mlp_kernel(%arg0: i32, %arg1: memref<16x256xbf16, #tpu.memory_space<vmem>>, %arg2: memref<256x256xbf16, #tpu.memory_space<vmem>>, %arg3: memref<1x256xf32, #tpu.memory_space<vmem>>, %arg4: memref<256x256xbf16, #tpu.memory_space<vmem>>, %arg5: memref<1x256xf32, #tpu.memory_space<vmem>>, %arg6: memref<16x256xf32, #tpu.memory_space<vmem>>) attributes {dimension_semantics = [#tpu.dimension_semantics<parallel>], iteration_bounds = array<i64: 1>, scalar_prefetch = 0 : i64, scratch_operands = 0 : i64, tpu.core_type = #tpu.core_type<tc>, window_params = [{transform_indices = @transform_0, window_bounds = array<i64: 16, 256>}, {pipeline_mode = #tpu.pipeline_mode<synchronous>, transform_indices = @transform_1, window_bounds = array<i64: 256, 256>}, {pipeline_mode = #tpu.pipeline_mode<synchronous>, transform_indices = @transform_2, window_bounds = array<i64: 1, 256>}, {pipeline_mode = #tpu.pipeline_mode<synchronous>, transform_indices = @transform_3, window_bounds = array<i64: 256, 256>}, {pipeline_mode = #tpu.pipeline_mode<synchronous>, transform_indices = @transform_4, window_bounds = array<i64: 1, 256>}, {transform_indices = @transform_5, window_bounds = array<i64: 16, 256>}]} {
    %c0 = arith.constant 0 : index
    %c0_0 = arith.constant 0 : index
    %0 = vector.load %arg1[%c0, %c0_0] : memref<16x256xbf16, #tpu.memory_space<vmem>>, vector<16x256xbf16>
    %c0_1 = arith.constant 0 : index
    %c0_2 = arith.constant 0 : index
    %1 = vector.load %arg2[%c0_1, %c0_2] : memref<256x256xbf16, #tpu.memory_space<vmem>>, vector<256x256xbf16>
    %c0_3 = arith.constant 0 : index
    %c0_4 = arith.constant 0 : index
    %2 = vector.load %arg4[%c0_3, %c0_4] : memref<256x256xbf16, #tpu.memory_space<vmem>>, vector<256x256xbf16>
    %c0_5 = arith.constant 0 : index
    %c0_6 = arith.constant 0 : index
    %3 = vector.load %arg3[%c0_5, %c0_6] : memref<1x256xf32, #tpu.memory_space<vmem>>, vector<1x256xf32>
    %c0_7 = arith.constant 0 : index
    %c0_8 = arith.constant 0 : index
    %4 = vector.load %arg5[%c0_7, %c0_8] : memref<1x256xf32, #tpu.memory_space<vmem>>, vector<1x256xf32>
    %cst = arith.constant dense<0.000000e+00> : vector<16x256xf32>
    %5 = tpu.matmul %0, %1, %cst {dimension_numbers = #tpu.dot_dimension_numbers<[1], [0], [0], [1], [0, 0, 1, 1], [], []>} : vector<16x256xbf16>, vector<256x256xbf16>, vector<16x256xf32> -> vector<16x256xf32>
    %6 = vector.broadcast %3 : vector<1x256xf32> to vector<16x256xf32>
    %7 = arith.addf %5, %6 : vector<16x256xf32>
    %cst_9 = arith.constant 0.000000e+00 : f32
    %8 = vector.broadcast %cst_9 : f32 to vector<16x256xf32>
    %9 = arith.maximumf %7, %8 : vector<16x256xf32>
    %10 = arith.truncf %9 : vector<16x256xf32> to vector<16x256xbf16>
    %cst_10 = arith.constant dense<0.000000e+00> : vector<16x256xf32>
    %11 = tpu.matmul %10, %2, %cst_10 {dimension_numbers = #tpu.dot_dimension_numbers<[1], [0], [0], [1], [0, 0, 1, 1], [], []>} : vector<16x256xbf16>, vector<256x256xbf16>, vector<16x256xf32> -> vector<16x256xf32>
    %12 = vector.broadcast %4 : vector<1x256xf32> to vector<16x256xf32>
    %13 = arith.addf %11, %12 : vector<16x256xf32>
    %c0_11 = arith.constant 0 : index
    %c0_12 = arith.constant 0 : index
    %14 = vector.load %arg6[%c0_11, %c0_12] : memref<16x256xf32, #tpu.memory_space<vmem>>, vector<16x256xf32>
    tpu.vector_store %arg6[%c0_11, %c0_12], %13 {strides = array<i32>} : memref<16x256xf32, #tpu.memory_space<vmem>>, vector<16x256xf32>,
    return
  }
  func.func @transform_0(%arg0: i32) -> (i32, i32) {
    %c0_i32 = arith.constant 0 : i32
    %c0_i32_0 = arith.constant 0 : i32
    return %arg0, %c0_i32 : i32, i32
  }
  func.func @transform_1(%arg0: i32) -> (i32, i32) {
    %c0_i32 = arith.constant 0 : i32
    %c0_i32_0 = arith.constant 0 : i32
    %c0_i32_1 = arith.constant 0 : i32
    return %c0_i32, %c0_i32_0 : i32, i32
  }
  func.func @transform_2(%arg0: i32) -> (i32, i32) {
    %c0_i32 = arith.constant 0 : i32
    %c0_i32_0 = arith.constant 0 : i32
    %c0_i32_1 = arith.constant 0 : i32
    return %c0_i32, %c0_i32_0 : i32, i32
  }
  func.func @transform_3(%arg0: i32) -> (i32, i32) {
    %c0_i32 = arith.constant 0 : i32
    %c0_i32_0 = arith.constant 0 : i32
    %c0_i32_1 = arith.constant 0 : i32
    return %c0_i32, %c0_i32_0 : i32, i32
  }
  func.func @transform_4(%arg0: i32) -> (i32, i32) {
    %c0_i32 = arith.constant 0 : i32
    %c0_i32_0 = arith.constant 0 : i32
    %c0_i32_1 = arith.constant 0 : i32
    return %c0_i32, %c0_i32_0 : i32, i32
  }
  func.func @transform_5(%arg0: i32) -> (i32, i32) {
    %c0_i32 = arith.constant 0 : i32
    %c0_i32_0 = arith.constant 0 : i32
    return %arg0, %c0_i32 : i32, i32
  }
}

module attributes {stable_mosaic.version = 11 : i64} {
  func.func @_mlp_kernel(%arg0: i32, %arg1: memref<16x256xbf16, #tpu.memory_space<vmem>>, %arg2: memref<256x256xbf16, #tpu.memory_space<vmem>>, %arg3: memref<1x256xf32, #tpu.memory_space<vmem>>, %arg4: memref<256x256xbf16, #tpu.memory_space<vmem>>, %arg5: memref<1x256xf32, #tpu.memory_space<vmem>>, %arg6: memref<16x256xf32, #tpu.memory_space<vmem>>) attributes {dimension_semantics = [#tpu.dimension_semantics<parallel>], iteration_bounds = array<i64: 1>, scalar_prefetch = 0 : i64, scratch_operands = 0 : i64, tpu.core_type = #tpu.core_type<tc>, window_params = [{transform_indices = @transform_0, window_bounds = array<i64: 16, 256>}, {pipeline_mode = #tpu.pipeline_mode<synchronous>, transform_indices = @transform_1, window_bounds = array<i64: 256, 256>}, {pipeline_mode = #tpu.pipeline_mode<synchronous>, transform_indices = @transform_2, window_bounds = array<i64: 1, 256>}, {pipeline_mode = #tpu.pipeline_mode<synchronous>, transform_indices = @transform_3, window_bounds = array<i64: 256, 256>}, {pipeline_mode = #tpu.pipeline_mode<synchronous>, transform_indices = @transform_4, window_bounds = array<i64: 1, 256>}, {transform_indices = @transform_5, window_bounds = array<i64: 16, 256>}]} {
    %c0 = arith.constant 0 : index
    %c0_0 = arith.constant 0 : index
    %0 = vector.load %arg1[%c0, %c0_0] : memref<16x256xbf16, #tpu.memory_space<vmem>>, vector<16x256xbf16>
    %c0_1 = arith.constant 0 : index
    %c0_2 = arith.constant 0 : index
    %1 = vector.load %arg2[%c0_1, %c0_2] : memref<256x256xbf16, #tpu.memory_space<vmem>>, vector<256x256xbf16>
    %c0_3 = arith.constant 0 : index
    %c0_4 = arith.constant 0 : index
    %2 = vector.load %arg4[%c0_3, %c0_4] : memref<256x256xbf16, #tpu.memory_space<vmem>>, vector<256x256xbf16>
    %c0_5 = arith.constant 0 : index
    %c0_6 = arith.constant 0 : index
    %3 = vector.load %arg3[%c0_5, %c0_6] : memref<1x256xf32, #tpu.memory_space<vmem>>, vector<1x256xf32>
    %c0_7 = arith.constant 0 : index
    %c0_8 = arith.constant 0 : index
    %4 = vector.load %arg5[%c0_7, %c0_8] : memref<1x256xf32, #tpu.memory_space<vmem>>, vector<1x256xf32>
    %cst = arith.constant dense<0.000000e+00> : vector<16x256xf32>
    %5 = tpu.matmul %0, %1, %cst {dimension_numbers = #tpu.dot_dimension_numbers<[1], [0], [0], [1], [0, 0, 1, 1], [], []>} : vector<16x256xbf16>, vector<256x256xbf16>, vector<16x256xf32> -> vector<16x256xf32>
    %6 = vector.broadcast %3 : vector<1x256xf32> to vector<16x256xf32>
    %7 = arith.addf %5, %6 : vector<16x256xf32>
    %cst_9 = arith.constant 0.000000e+00 : f32
    %8 = vector.broadcast %cst_9 : f32 to vector<16x256xf32>
    %9 = arith.maximumf %7, %8 : vector<16x256xf32>
    %10 = arith.truncf %9 : vector<16x256xf32> to vector<16x256xbf16>
    %cst_10 = arith.constant dense<0.000000e+00> : vector<16x256xf32>
    %11 = tpu.matmul %10, %2, %cst_10 {dimension_numbers = #tpu.dot_dimension_numbers<[1], [0], [0], [1], [0, 0, 1, 1], [], []>} : vector<16x256xbf16>, vector<256x256xbf16>, vector<16x256xf32> -> vector<16x256xf32>
    %12 = vector.broadcast %4 : vector<1x256xf32> to vector<16x256xf32>
    %13 = arith.addf %11, %12 : vector<16x256xf32>
    %c0_11 = arith.constant 0 : index
    %c0_12 = arith.constant 0 : index
    %14 = vector.load %arg6[%c0_11, %c0_12] : memref<16x256xf32, #tpu.memory_space<vmem>>, vector<16x256xf32>
    tpu.vector_store %arg6[%c0_11, %c0_12], %13 {strides = array<i32>} : memref<16x256xf32, #tpu.memory_space<vmem>>, vector<16x256xf32>,
    return
  }
  func.func @transform_0(%arg0: i32) -> (i32, i32) {
    %c0_i32 = arith.constant 0 : i32
    %c0_i32_0 = arith.constant 0 : i32
    return %arg0, %c0_i32 : i32, i32
  }
  func.func @transform_1(%arg0: i32) -> (i32, i32) {
    %c0_i32 = arith.constant 0 : i32
    %c0_i32_0 = arith.constant 0 : i32
    %c0_i32_1 = arith.constant 0 : i32
    return %c0_i32, %c0_i32_0 : i32, i32
  }
  func.func @transform_2(%arg0: i32) -> (i32, i32) {
    %c0_i32 = arith.constant 0 : i32
    %c0_i32_0 = arith.constant 0 : i32
    %c0_i32_1 = arith.constant 0 : i32
    return %c0_i32, %c0_i32_0 : i32, i32
  }
  func.func @transform_3(%arg0: i32) -> (i32, i32) {
    %c0_i32 = arith.constant 0 : i32
    %c0_i32_0 = arith.constant 0 : i32
    %c0_i32_1 = arith.constant 0 : i32
    return %c0_i32, %c0_i32_0 : i32, i32
  }
  func.func @transform_4(%arg0: i32) -> (i32, i32) {
    %c0_i32 = arith.constant 0 : i32
    %c0_i32_0 = arith.constant 0 : i32
    %c0_i32_1 = arith.constant 0 : i32
    return %c0_i32, %c0_i32_0 : i32, i32
  }
  func.func @transform_5(%arg0: i32) -> (i32, i32) {
    %c0_i32 = arith.constant 0 : i32
    %c0_i32_0 = arith.constant 0 : i32
    return %arg0, %c0_i32 : i32, i32
  }
}

</mosaic_0001>

<bundles_post_ra>
// kernel: tpu_custom_call.1
= control target key start
LH: loop header
LB: loop body
LE: loop exit
PB: predicated region body
PF: predicated region fallthrough
CT: control target
= control target key end

     0   :  { %10 = vsyncpa [#allocation3], 0  ;;  %s911_s0 = inlined_call_operand.hbm [shape: bf16[16,256], index: 0, kind: input, shape index: {}]   ;;  %s912_s1 = inlined_call_operand.hbm [shape: bf16[256,256], index: 1, kind: input, shape index: {}]   ;;  %s913_s2 = inlined_call_operand.vmem [shape: f32[1,256], index: 2, kind: input, shape index: {}]   ;;  %s914_s3 = inlined_call_operand.hbm [shape: bf16[256,256], index: 3, kind: input, shape index: {}]   ;;  %s915_s4 = inlined_call_operand.vmem [shape: f32[1,256], index: 4, kind: input, shape index: {}]   ;;  %s916_s5 = inlined_call_operand.hbm [shape: f32[16,256], index: 5, kind: output, shape index: {}]  }
   0x1   :  { %11 = vsyncpa [#allocation6], 0 }
   0x2   :  { %12 = vsyncpa [#allocation4], 0  ;;  %s855_s18 = smov [#allocation5]   ;;  %s856_s20 = smov [#allocation2]  }
   0x3   :  { %s30_s19 = sshll.u32 %s855_s18, 4  ;;  %s18_s21 = sshll.u32 %s856_s20, 4  ;;  %s31_s19 = int_to_ptr.vmem [resolvable:$true] %s30_s19  ;;  %s19_s21 = int_to_ptr.vmem [resolvable:$true] %s18_s21 }
   0x4   :  { %s777_s22 = scalar_lea.vmem %s31_s19, 4096  ;;  %p782_p1 = scmp.lt.s32.totalorder %s31_s19, %s31_s19 }
   0x5   :  { %p778_p0 = scmp.ne.s32.totalorder %s31_s19, %s777_s22  ;;  %p783_p2 = scmp.lt.s32.totalorder %s777_s22, %s777_s22 }
   0x7   :  { %p784_p3 = por %p783_p2, %p782_p1 }
   0x9   :  { %p785_p4 = pnand %p784_p3, %p778_p0 }
   0xb   :  { %788 = shalt.err (!%p785_p4)
}
   0xc   :  { %s857_s23 = smov 128   ;;  %s858_s24 = smov 8  }
   0xd   :  { %36 = dma.hbm_to_vmem [thread:$0]  %s912_s1, 4096, %s31_s19, [#allocation6], %s857_s23, %s857_s23, %s858_s24  }
   0xe   :  { %s797_s27 = scalar_lea.vmem %s19_s21, 256  ;;  %p802_p6 = scmp.lt.s32.totalorder %s19_s21, %s19_s21 }
   0xf   :  { %p798_p5 = scmp.ne.s32.totalorder %s19_s21, %s797_s27  ;;  %p803_p7 = scmp.lt.s32.totalorder %s797_s27, %s797_s27 }
  0x11   :  { %p804_p8 = por %p803_p7, %p802_p6 }
  0x13   :  { %p805_p9 = pnand %p804_p8, %p798_p5 }
  0x15   :  { %808 = shalt.err (!%p805_p9)
}
  0x16   :  { %24 = dma.hbm_to_vmem [thread:$0]  %s911_s0, 256, %s19_s21, [#allocation3], %s857_s23, %s857_s23, %s858_s24  }
  0x17   :  { %s859_s30 = smov [#allocation7]  }
  0x18   :  { %s44_s6 = sshll.u32 %s859_s30, 4  ;;  %s45_s6 = int_to_ptr.vmem [resolvable:$true] %s44_s6 }
  0x19   :  { %s817_s7 = scalar_lea.vmem %s45_s6, 4096  ;;  %p822_p11 = scmp.lt.s32.totalorder %s45_s6, %s45_s6 }
  0x1a   :  { %p818_p10 = scmp.ne.s32.totalorder %s45_s6, %s817_s7  ;;  %p823_p12 = scmp.lt.s32.totalorder %s817_s7, %s817_s7 }
  0x1c   :  { %p824_p13 = por %p823_p12, %p822_p11 }
  0x1e   :  { %p825_p0 = pnand %p824_p13, %p818_p10 }
  0x20   :  { %828 = shalt.err (!%p825_p0)
}
  0x21   :  { %50 = dma.hbm_to_vmem [thread:$0]  %s914_s3, 4096, %s45_s6, [#allocation6], %s857_s23, %s857_s23, %s858_s24  }
  0x22   :  { %849 = dma.done.wait [#allocation3], 256  }
  0x23   :  { %850 = vsyncadd [#allocation3], 4294967040 }
  0x24   :  { %851 = dma.done.wait [#allocation6], 8192  }
  0x25   :  { %852 = vsyncadd [#allocation6], 4294959104  ;;  %v670_v0 = vld [vmem:[#allocation5 + $0x74] ss:$8 sps:$4 sm:$0xff]   ;;  %v672_v1 = vld [vmem:[#allocation5 + $0x70] ss:$8 sps:$4 sm:$0xff]  }
  0x26   :  { %311 = vmatprep.subr.bf16.mxu0 %v670_v0  ;;  %v673_v2 = vld [vmem:[#allocation5 + $0x64] ss:$8 sps:$4 sm:$0xff]   ;;  %v675_v3 = vld [vmem:[#allocation5 + $0x60] ss:$8 sps:$4 sm:$0xff]   ;;  %v676_v4 = vld [vmem:[#allocation5 + $0x54] ss:$8 sps:$4 sm:$0xff]  }
  0x27   :  { %312 = vmatpush1.bf16.msra.mxu0 %v672_v1  ;;  %v678_v5 = vld [vmem:[#allocation5 + $0x50] ss:$8 sps:$4 sm:$0xff]   ;;  %v679_v6 = vld [vmem:[#allocation5 + $0x44] ss:$8 sps:$4 sm:$0xff]   ;;  %v681_v7 = vld [vmem:[#allocation5 + $0x40] ss:$8 sps:$4 sm:$0xff]  }
  0x28   :  { %313 = vmatprep.subr.bf16.mxu0 %v673_v2  ;;  %v682_v8 = vld [vmem:[#allocation5 + $0x34] ss:$8 sps:$4 sm:$0xff]   ;;  %v684_v9 = vld [vmem:[#allocation5 + $0x30] ss:$8 sps:$4 sm:$0xff]   ;;  %v685_v10 = vld [vmem:[#allocation5 + $0x24] ss:$8 sps:$4 sm:$0xff]   ;;  %v131_v2 = vlaneseq }
  0x29   :  { %v687_v11 = vld [vmem:[#allocation5 + $0x20] ss:$8 sps:$4 sm:$0xff]   ;;  %v688_v12 = vld [vmem:[#allocation5 + $0x14] ss:$8 sps:$4 sm:$0xff]   ;;  %v690_v13 = vld [vmem:[#allocation5 + $0x10] ss:$8 sps:$4 sm:$0xff]  }
  0x2a   :  { %v691_v14 = vld [vmem:[#allocation5 + $0x4] ss:$8 sps:$4 sm:$0xff]   ;;  %v720_v15 = vld [vmem:[#allocation2 + $0x4] ss:$8 sps:$4 sm:$0xff]   ;;  %v723_v17 = vld [vmem:[#allocation7 + $0x70] ss:$8 sps:$4 sm:$0xff]  }
  0x2b   :  { %314 = vmatpush1.bf16.msra.mxu0 %v675_v3  ;;  %v721_v16 = vld [vmem:[#allocation7 + $0x74] ss:$8 sps:$4 sm:$0xff]   ;;  %343 = vmatprep.mubr.bf16.mxu0 %v720_v15  ;;  %v724_v18 = vld [vmem:[#allocation7 + $0x64] ss:$8 sps:$4 sm:$0xff]   ;;  %v726_v19 = vld [vmem:[#allocation7 + $0x60] ss:$8 sps:$4 sm:$0xff]  }
  0x2c   :  { %315 = vmatprep.subr.bf16.mxu0 %v676_v4  ;;  %531 = vmatprep.subr.bf16.mxu1 %v721_v16  ;;  %v693_v20 = vld [vmem:[#allocation5] ss:$8 sps:$4 sm:$0xff]   ;;  %v727_v21 = vld [vmem:[#allocation7 + $0x54] ss:$8 sps:$4 sm:$0xff]   ;;  %v729_v23 = vld [vmem:[#allocation7 + $0x50] ss:$8 sps:$4 sm:$0xff]  }
  0x2d   :  { %532 = vmatpush1.bf16.msra.mxu1 %v723_v17  ;;  %v694_v22 = vld [vmem:[#allocation5 + $0xf4] ss:$8 sps:$4 sm:$0xff]   ;;  %v696_v24 = vld [vmem:[#allocation5 + $0xf0] ss:$8 sps:$4 sm:$0xff]   ;;  %v730_v25 = vld [vmem:[#allocation7 + $0x44] ss:$8 sps:$4 sm:$0xff]  }
  0x2e   :  { %533 = vmatprep.subr.bf16.mxu1 %v724_v18  ;;  %v697_v26 = vld [vmem:[#allocation5 + $0xe4] ss:$8 sps:$4 sm:$0xff]   ;;  %v732_v27 = vld [vmem:[#allocation7 + $0x40] ss:$8 sps:$4 sm:$0xff]   ;;  %v733_v29 = vld [vmem:[#allocation7 + $0x34] ss:$8 sps:$4 sm:$0xff]  }
  0x2f   :  { %316 = vmatpush1.bf16.msra.mxu0 %v678_v5  ;;  %v699_v28 = vld [vmem:[#allocation5 + $0xe0] ss:$8 sps:$4 sm:$0xff]   ;;  %v700_v30 = vld [vmem:[#allocation5 + $0xd4] ss:$8 sps:$4 sm:$0xff]   ;;  %v735_v31 = vld [vmem:[#allocation7 + $0x30] ss:$8 sps:$4 sm:$0xff]  }
  0x30   :  { %317 = vmatprep.subr.bf16.mxu0 %v679_v6  ;;  %v702_v32 = vld [vmem:[#allocation5 + $0xd0] ss:$8 sps:$4 sm:$0xff]   ;;  %v736_v33 = vld [vmem:[#allocation7 + $0x24] ss:$8 sps:$4 sm:$0xff]   ;;  %v738_v35 = vld [vmem:[#allocation7 + $0x20] ss:$8 sps:$4 sm:$0xff]  }
  0x31   :  { %534 = vmatpush1.bf16.msra.mxu1 %v726_v19  ;;  %v703_v34 = vld [vmem:[#allocation5 + $0xc4] ss:$8 sps:$4 sm:$0xff]   ;;  %v705_v36 = vld [vmem:[#allocation5 + $0xc0] ss:$8 sps:$4 sm:$0xff]   ;;  %v739_v37 = vld [vmem:[#allocation7 + $0x14] ss:$8 sps:$4 sm:$0xff]  }
  0x32   :  { %535 = vmatprep.subr.bf16.mxu1 %v727_v21  ;;  %v706_v38 = vld [vmem:[#allocation5 + $0xb4] ss:$8 sps:$4 sm:$0xff]   ;;  %v741_v39 = vld [vmem:[#allocation7 + $0x10] ss:$8 sps:$4 sm:$0xff]   ;;  %v742_v41 = vld [vmem:[#allocation7 + $0x4] ss:$8 sps:$4 sm:$0xff]  }
  0x33   :  { %318 = vmatpush1.bf16.msra.mxu0 %v681_v7  ;;  %v708_v40 = vld [vmem:[#allocation5 + $0xb0] ss:$8 sps:$4 sm:$0xff]   ;;  %v709_v42 = vld [vmem:[#allocation5 + $0xa4] ss:$8 sps:$4 sm:$0xff]   ;;  %v744_v43 = vld [vmem:[#allocation7] ss:$8 sps:$4 sm:$0xff]  }
  0x34   :  { %319 = vmatprep.subr.bf16.mxu0 %v682_v8  ;;  %v711_v44 = vld [vmem:[#allocation5 + $0xa0] ss:$8 sps:$4 sm:$0xff]   ;;  %v745_v45 = vld [vmem:[#allocation7 + $0xf4] ss:$8 sps:$4 sm:$0xff]   ;;  %v747_v47 = vld [vmem:[#allocation7 + $0xf0] ss:$8 sps:$4 sm:$0xff]  }
  0x35   :  { %536 = vmatpush1.bf16.msra.mxu1 %v729_v23  ;;  %v712_v46 = vld [vmem:[#allocation5 + $0x94] ss:$8 sps:$4 sm:$0xff]   ;;  %v714_v48 = vld [vmem:[#allocation5 + $0x90] ss:$8 sps:$4 sm:$0xff]   ;;  %v748_v49 = vld [vmem:[#allocation7 + $0xe4] ss:$8 sps:$4 sm:$0xff]  }
  0x36   :  { %537 = vmatprep.subr.bf16.mxu1 %v730_v25  ;;  %v715_v50 = vld [vmem:[#allocation5 + $0x84] ss:$8 sps:$4 sm:$0xff]   ;;  %v750_v51 = vld [vmem:[#allocation7 + $0xe0] ss:$8 sps:$4 sm:$0xff]   ;;  %v751_v53 = vld [vmem:[#allocation7 + $0xd4] ss:$8 sps:$4 sm:$0xff]  }
  0x37   :  { %320 = vmatpush1.bf16.msra.mxu0 %v684_v9  ;;  %v717_v52 = vld [vmem:[#allocation5 + $0x80] ss:$8 sps:$4 sm:$0xff]   ;;  %v718_v54 = vld [vmem:[#allocation2] ss:$8 sps:$4 sm:$0xff]   ;;  %v754_v56 = vld [vmem:[#allocation7 + $0xc4] ss:$8 sps:$4 sm:$0xff]  }
  0x38   :  { %321 = vmatprep.subr.bf16.mxu0 %v685_v10  ;;  %v753_v55 = vld [vmem:[#allocation7 + $0xd0] ss:$8 sps:$4 sm:$0xff]   ;;  %v756_v57 = vld [vmem:[#allocation7 + $0xc0] ss:$8 sps:$4 sm:$0xff]   ;;  %v757_v58 = vld [vmem:[#allocation7 + $0xb4] ss:$8 sps:$4 sm:$0xff]  }
  0x39   :  { %538 = vmatpush1.bf16.msra.mxu1 %v732_v27  ;;  %v759_v59 = vld [vmem:[#allocation7 + $0xb0] ss:$8 sps:$4 sm:$0xff]   ;;  %v760_v60 = vld [vmem:[#allocation7 + $0xa4] ss:$8 sps:$4 sm:$0xff]   ;;  %v762_v61 = vld [vmem:[#allocation7 + $0xa0] ss:$8 sps:$4 sm:$0xff]  }
  0x3a   :  { %539 = vmatprep.subr.bf16.mxu1 %v733_v29  ;;  %v763_v62 = vld [vmem:[#allocation7 + $0x94] ss:$8 sps:$4 sm:$0xff]   ;;  %v765_v63 = vld [vmem:[#allocation7 + $0x90] ss:$8 sps:$4 sm:$0xff]   ;;  %v766_v0 = vld [vmem:[#allocation7 + $0x84] ss:$8 sps:$4 sm:$0xff]  }
  0x3b   :  { %322 = vmatpush1.bf16.msra.mxu0 %v687_v11  ;;  %v768_v1 = vld [vmem:[#allocation7 + $0x80] ss:$8 sps:$4 sm:$0xff]   ;;  %v132_v3 = vshrl.u32 %v131_v2, 7  ;;  %v128_v6 = vld [vmem:[%s913_s2] sm:$0x3]  ;;  %s860_s10 = smov [#allocation8]  }
  0x3c   :  { %323 = vmatprep.subr.bf16.mxu0 %v688_v12  ;;  %v129_v23 = vld [vmem:[%s915_s4] sm:$0x3]  ;;  %s583_s11 = sshll.u32 %s860_s10, 4  ;;  %s584_s11 = int_to_ptr.vmem [resolvable:$true] %s583_s11 }
  0x3d   :  { %540 = vmatpush1.bf16.msra.mxu1 %v735_v31  ;;  %v137_v4 = vsub.s32 1, %v132_v3  ;;  %v133_v5 = vsub.s32 0, %v132_v3  ;;  %s829_s12 = scalar_lea.vmem %s584_s11, 512  ;;  %p834_p2 = scmp.lt.s32.totalorder %s584_s11, %s584_s11 }
  0x3e   :  { %541 = vmatprep.subr.bf16.mxu1 %v736_v33  ;;  %p830_p1 = scmp.ne.s32.totalorder %s584_s11, %s829_s12  ;;  %p835_p3 = scmp.lt.s32.totalorder %s829_s12, %s829_s12 }
  0x3f   :  { %324 = vmatpush1.bf16.msra.mxu0 %v690_v13  ;;  %v138_v8 = vrot.slane %v128_v6, %v137_v4  ;;  %v134_v9 = vrot.slane %v128_v6, %v133_v5  ;;  %v368_v25 = vrot.slane %v129_v23, %v137_v4 }
  0x40   :  { %325 = vmatprep.subr.bf16.mxu0 %v691_v14  ;;  %p836_p4 = por %p835_p3, %p834_p2 }
  0x41   :  { %542 = vmatpush1.bf16.msra.mxu1 %v738_v35 }
  0x42   :  { %543 = vmatprep.subr.bf16.mxu1 %v739_v37  ;;  %p837_p5 = pnand %p836_p4, %p830_p1 }
  0x43   :  { %326 = vmatpush1.bf16.msra.mxu0 %v693_v20 }
  0x44   :  { %327 = vmatprep.subr.bf16.mxu0 %v694_v22 }
  0x45   :  { %544 = vmatpush1.bf16.msra.mxu1 %v741_v39 }
  0x46   :  { %545 = vmatprep.subr.bf16.mxu1 %v742_v41 }
  0x47   :  { %328 = vmatpush2.bf16.msra.mxu0 %v696_v24  ;;  %v364_v24 = vrot.slane %v129_v23, %v133_v5 }
  0x48   :  { %329 = vmatprep.subr.bf16.mxu0 %v697_v26 }
  0x49   :  { %546 = vmatpush1.bf16.msra.mxu1 %v744_v43 }
  0x4a   :  { %547 = vmatprep.subr.bf16.mxu1 %v745_v45 }
  0x4b   :  { %330 = vmatpush2.bf16.msra.mxu0 %v699_v28 }
  0x4c   :  { %331 = vmatprep.subr.bf16.mxu0 %v700_v30 }
  0x4d   :  { %548 = vmatpush2.bf16.msra.mxu1 %v747_v47 }
  0x4e   :  { %549 = vmatprep.subr.bf16.mxu1 %v748_v49 }
  0x4f   :  { %332 = vmatpush2.bf16.msra.mxu0 %v702_v32 }
  0x50   :  { %333 = vmatprep.subr.bf16.mxu0 %v703_v34 }
  0x51   :  { %550 = vmatpush2.bf16.msra.mxu1 %v750_v51 }
  0x52   :  { %551 = vmatprep.subr.bf16.mxu1 %v751_v53 }
  0x53   :  { %334 = vmatpush2.bf16.msra.mxu0 %v705_v36 }
  0x54   :  { %335 = vmatprep.subr.bf16.mxu0 %v706_v38 }
  0x55   :  { %552 = vmatpush2.bf16.msra.mxu1 %v753_v55 }
  0x56   :  { %553 = vmatprep.subr.bf16.mxu1 %v754_v56 }
  0x57   :  { %336 = vmatpush2.bf16.msra.mxu0 %v708_v40 }
  0x58   :  { %337 = vmatprep.subr.bf16.mxu0 %v709_v42 }
  0x59   :  { %554 = vmatpush2.bf16.msra.mxu1 %v756_v57 }
  0x5a   :  { %555 = vmatprep.subr.bf16.mxu1 %v757_v58 }
  0x5b   :  { %338 = vmatpush2.bf16.msra.mxu0 %v711_v44 }
  0x5c   :  { %339 = vmatprep.subr.bf16.mxu0 %v712_v46 }
  0x5d   :  { %556 = vmatpush2.bf16.msra.mxu1 %v759_v59 }
  0x5e   :  { %557 = vmatprep.subr.bf16.mxu1 %v760_v60 }
  0x5f   :  { %340 = vmatpush2.bf16.msra.mxu0 %v714_v48 }
  0x60   :  { %341 = vmatprep.subr.bf16.mxu0 %v715_v50 }
  0x61   :  { %558 = vmatpush2.bf16.msra.mxu1 %v762_v61 }
  0x62   :  { %559 = vmatprep.subr.bf16.mxu1 %v763_v62 }
  0x63   :  { %342 = vmatpush2.bf16.msra.mxu0 %v717_v52 }
  0x65   :  { %560 = vmatpush2.bf16.msra.mxu1 %v765_v63 }
  0x66   :  { %344 = vmatmul.mubr.bf16.vlgmr.msra.gmra.mxu0 %v718_v54  ;;  %561 = vmatprep.subr.bf16.mxu1 %v766_v0 }
  0x69   :  { %562 = vmatpush2.bf16.msra.mxu1 %v768_v1 }
 0x126   :  { %v345_v7 = vpop.f32.mrf.mxu0 }
 0x127   :  { %v346_v14 = vadd.f32 %v345_v7, %v134_v9 }
 0x128   :  { %v347_v10 = vpop.f32.mrf.mxu0 }
 0x129   :  { %v348_v12 = vadd.f32 %v347_v10, %v138_v8  ;;  %v354_v20 = vmax.f32 %v346_v14, 0.0 }
 0x12a   :  { %v349_v11 = vpop.f32.mrf.mxu0 }
 0x12b   :  { %v350_v13 = vadd.f32 %v349_v11, %v134_v9  ;;  %v355_v18 = vmax.f32 %v348_v12, 0.0 }
 0x12c   :  { %v351_v15 = vpop.f32.mrf.mxu0 }
 0x12d   :  { %v352_v16 = vadd.f32 %v351_v15, %v138_v8  ;;  %v356_v17 = vmax.f32 %v350_v13, 0.0 }
 0x12f   :  { %v357_v19 = vmax.f32 %v352_v16, 0.0  ;;  %v358_v22 = vpack.c.bf16 %v356_v17, %v354_v20 }
 0x131   :  { %v359_v21 = vpack.c.bf16 %v357_v19, %v355_v18 }
 0x133   :  { %563 = vmatprep.mubr.bf16.mxu1 %v359_v21 }
 0x134   :  { %564 = vmatmul.mubr.bf16.vlgmr.msra.gmra.mxu1 %v358_v22 }
 0x1f4   :  { %v565_v26 = vpop.f32.mrf.mxu1 }
 0x1f5   :  { %v566_v27 = vadd.f32 %v565_v26, %v364_v24 }
 0x1f6   :  { %v567_v28 = vpop.f32.mrf.mxu1 }
 0x1f7   :  { %574 = vst [vmem:[#allocation8] sm:$0xff] %v566_v27  ;;  %v568_v29 = vadd.f32 %v567_v28, %v368_v25 }
 0x1f8   :  { %v569_v30 = vpop.f32.mrf.mxu1 }
 0x1f9   :  { %575 = vst [vmem:[#allocation8 + $0x8] sm:$0xff] %v568_v29  ;;  %v570_v31 = vadd.f32 %v569_v30, %v364_v24 }
 0x1fa   :  { %v571_v32 = vpop.f32.mrf.mxu1 }
 0x1fb   :  { %576 = vst [vmem:[#allocation8 + $0x10] sm:$0xff] %v570_v31  ;;  %v572_v33 = vadd.f32 %v571_v32, %v368_v25 }
 0x1fd   :  { %577 = vst [vmem:[#allocation8 + $0x18] sm:$0xff] %v572_v33 }
 0x1fe   :  { %840 = shalt.err (!%p837_p5)
}
 0x1ff   :  { %s861_s4 = smov 256   ;;  %s862_s13 = smov 16  }
 0x200   :  { %589 = dma.vmem_to_hbm [thread:$0]  %s584_s11, 512, %s916_s5, [#allocation4], %s861_s4, %s861_s4, %s862_s13  }
 0x201   :  { %853 = dma.done.wait [#allocation4], 512  }
 0x202   :  { %854 = vsyncadd [#allocation4], 4294966784 }
 0x203   :  { %593 = vsyncpa [#allocation3], 1 }
 0x204   :  { %594 = vsyncpa [#allocation6], 1 }
 0x205   :  { %595 = vsyncpa [#allocation4], 1 }

// kernel: tpu_custom_call.1
= control target key start
LH: loop header
LB: loop body
LE: loop exit
PB: predicated region body
PF: predicated region fallthrough
CT: control target
= control target key end

     0   :  { %10 = vsyncpa [#allocation3], 0  ;;  %s911_s0 = inlined_call_operand.hbm [shape: bf16[16,256], index: 0, kind: input, shape index: {}]   ;;  %s912_s1 = inlined_call_operand.hbm [shape: bf16[256,256], index: 1, kind: input, shape index: {}]   ;;  %s913_s2 = inlined_call_operand.vmem [shape: f32[1,256], index: 2, kind: input, shape index: {}]   ;;  %s914_s3 = inlined_call_operand.hbm [shape: bf16[256,256], index: 3, kind: input, shape index: {}]   ;;  %s915_s4 = inlined_call_operand.vmem [shape: f32[1,256], index: 4, kind: input, shape index: {}]   ;;  %s916_s5 = inlined_call_operand.hbm [shape: f32[16,256], index: 5, kind: output, shape index: {}]  }
   0x1   :  { %11 = vsyncpa [#allocation6], 0 }
   0x2   :  { %12 = vsyncpa [#allocation4], 0  ;;  %s855_s18 = smov [#allocation5]   ;;  %s856_s20 = smov [#allocation2]  }
   0x3   :  { %s30_s19 = sshll.u32 %s855_s18, 4  ;;  %s18_s21 = sshll.u32 %s856_s20, 4  ;;  %s31_s19 = int_to_ptr.vmem [resolvable:$true] %s30_s19  ;;  %s19_s21 = int_to_ptr.vmem [resolvable:$true] %s18_s21 }
   0x4   :  { %s777_s22 = scalar_lea.vmem %s31_s19, 4096  ;;  %p782_p1 = scmp.lt.s32.totalorder %s31_s19, %s31_s19 }
   0x5   :  { %p778_p0 = scmp.ne.s32.totalorder %s31_s19, %s777_s22  ;;  %p783_p2 = scmp.lt.s32.totalorder %s777_s22, %s777_s22 }
   0x7   :  { %p784_p3 = por %p783_p2, %p782_p1 }
   0x9   :  { %p785_p4 = pnand %p784_p3, %p778_p0 }
   0xb   :  { %788 = shalt.err (!%p785_p4)
}
   0xc   :  { %s857_s23 = smov 128   ;;  %s858_s24 = smov 8  }
   0xd   :  { %36 = dma.hbm_to_vmem [thread:$0]  %s912_s1, 4096, %s31_s19, [#allocation6], %s857_s23, %s857_s23, %s858_s24  }
   0xe   :  { %s797_s27 = scalar_lea.vmem %s19_s21, 256  ;;  %p802_p6 = scmp.lt.s32.totalorder %s19_s21, %s19_s21 }
   0xf   :  { %p798_p5 = scmp.ne.s32.totalorder %s19_s21, %s797_s27  ;;  %p803_p7 = scmp.lt.s32.totalorder %s797_s27, %s797_s27 }
  0x11   :  { %p804_p8 = por %p803_p7, %p802_p6 }
  0x13   :  { %p805_p9 = pnand %p804_p8, %p798_p5 }
  0x15   :  { %808 = shalt.err (!%p805_p9)
}
  0x16   :  { %24 = dma.hbm_to_vmem [thread:$0]  %s911_s0, 256, %s19_s21, [#allocation3], %s857_s23, %s857_s23, %s858_s24  }
  0x17   :  { %s859_s30 = smov [#allocation7]  }
  0x18   :  { %s44_s6 = sshll.u32 %s859_s30, 4  ;;  %s45_s6 = int_to_ptr.vmem [resolvable:$true] %s44_s6 }
  0x19   :  { %s817_s7 = scalar_lea.vmem %s45_s6, 4096  ;;  %p822_p11 = scmp.lt.s32.totalorder %s45_s6, %s45_s6 }
  0x1a   :  { %p818_p10 = scmp.ne.s32.totalorder %s45_s6, %s817_s7  ;;  %p823_p12 = scmp.lt.s32.totalorder %s817_s7, %s817_s7 }
  0x1c   :  { %p824_p13 = por %p823_p12, %p822_p11 }
  0x1e   :  { %p825_p0 = pnand %p824_p13, %p818_p10 }
  0x20   :  { %828 = shalt.err (!%p825_p0)
}
  0x21   :  { %50 = dma.hbm_to_vmem [thread:$0]  %s914_s3, 4096, %s45_s6, [#allocation6], %s857_s23, %s857_s23, %s858_s24  }
  0x22   :  { %849 = dma.done.wait [#allocation3], 256  }
  0x23   :  { %850 = vsyncadd [#allocation3], 4294967040 }
  0x24   :  { %851 = dma.done.wait [#allocation6], 8192  }
  0x25   :  { %852 = vsyncadd [#allocation6], 4294959104  ;;  %v670_v0 = vld [vmem:[#allocation5 + $0x74] ss:$8 sps:$4 sm:$0xff]   ;;  %v672_v1 = vld [vmem:[#allocation5 + $0x70] ss:$8 sps:$4 sm:$0xff]  }
  0x26   :  { %311 = vmatprep.subr.bf16.mxu0 %v670_v0  ;;  %v673_v2 = vld [vmem:[#allocation5 + $0x64] ss:$8 sps:$4 sm:$0xff]   ;;  %v675_v3 = vld [vmem:[#allocation5 + $0x60] ss:$8 sps:$4 sm:$0xff]   ;;  %v676_v4 = vld [vmem:[#allocation5 + $0x54] ss:$8 sps:$4 sm:$0xff]  }
  0x27   :  { %312 = vmatpush1.bf16.msra.mxu0 %v672_v1  ;;  %v678_v5 = vld [vmem:[#allocation5 + $0x50] ss:$8 sps:$4 sm:$0xff]   ;;  %v679_v6 = vld [vmem:[#allocation5 + $0x44] ss:$8 sps:$4 sm:$0xff]   ;;  %v681_v7 = vld [vmem:[#allocation5 + $0x40] ss:$8 sps:$4 sm:$0xff]  }
  0x28   :  { %313 = vmatprep.subr.bf16.mxu0 %v673_v2  ;;  %v682_v8 = vld [vmem:[#allocation5 + $0x34] ss:$8 sps:$4 sm:$0xff]   ;;  %v684_v9 = vld [vmem:[#allocation5 + $0x30] ss:$8 sps:$4 sm:$0xff]   ;;  %v685_v10 = vld [vmem:[#allocation5 + $0x24] ss:$8 sps:$4 sm:$0xff]   ;;  %v131_v2 = vlaneseq }
  0x29   :  { %v687_v11 = vld [vmem:[#allocation5 + $0x20] ss:$8 sps:$4 sm:$0xff]   ;;  %v688_v12 = vld [vmem:[#allocation5 + $0x14] ss:$8 sps:$4 sm:$0xff]   ;;  %v690_v13 = vld [vmem:[#allocation5 + $0x10] ss:$8 sps:$4 sm:$0xff]  }
  0x2a   :  { %v691_v14 = vld [vmem:[#allocation5 + $0x4] ss:$8 sps:$4 sm:$0xff]   ;;  %v720_v15 = vld [vmem:[#allocation2 + $0x4] ss:$8 sps:$4 sm:$0xff]   ;;  %v723_v17 = vld [vmem:[#allocation7 + $0x70] ss:$8 sps:$4 sm:$0xff]  }
  0x2b   :  { %314 = vmatpush1.bf16.msra.mxu0 %v675_v3  ;;  %v721_v16 = vld [vmem:[#allocation7 + $0x74] ss:$8 sps:$4 sm:$0xff]   ;;  %343 = vmatprep.mubr.bf16.mxu0 %v720_v15  ;;  %v724_v18 = vld [vmem:[#allocation7 + $0x64] ss:$8 sps:$4 sm:$0xff]   ;;  %v726_v19 = vld [vmem:[#allocation7 + $0x60] ss:$8 sps:$4 sm:$0xff]  }
  0x2c   :  { %315 = vmatprep.subr.bf16.mxu0 %v676_v4  ;;  %531 = vmatprep.subr.bf16.mxu1 %v721_v16  ;;  %v693_v20 = vld [vmem:[#allocation5] ss:$8 sps:$4 sm:$0xff]   ;;  %v727_v21 = vld [vmem:[#allocation7 + $0x54] ss:$8 sps:$4 sm:$0xff]   ;;  %v729_v23 = vld [vmem:[#allocation7 + $0x50] ss:$8 sps:$4 sm:$0xff]  }
  0x2d   :  { %532 = vmatpush1.bf16.msra.mxu1 %v723_v17  ;;  %v694_v22 = vld [vmem:[#allocation5 + $0xf4] ss:$8 sps:$4 sm:$0xff]   ;;  %v696_v24 = vld [vmem:[#allocation5 + $0xf0] ss:$8 sps:$4 sm:$0xff]   ;;  %v730_v25 = vld [vmem:[#allocation7 + $0x44] ss:$8 sps:$4 sm:$0xff]  }
  0x2e   :  { %533 = vmatprep.subr.bf16.mxu1 %v724_v18  ;;  %v697_v26 = vld [vmem:[#allocation5 + $0xe4] ss:$8 sps:$4 sm:$0xff]   ;;  %v732_v27 = vld [vmem:[#allocation7 + $0x40] ss:$8 sps:$4 sm:$0xff]   ;;  %v733_v29 = vld [vmem:[#allocation7 + $0x34] ss:$8 sps:$4 sm:$0xff]  }
  0x2f   :  { %316 = vmatpush1.bf16.msra.mxu0 %v678_v5  ;;  %v699_v28 = vld [vmem:[#allocation5 + $0xe0] ss:$8 sps:$4 sm:$0xff]   ;;  %v700_v30 = vld [vmem:[#allocation5 + $0xd4] ss:$8 sps:$4 sm:$0xff]   ;;  %v735_v31 = vld [vmem:[#allocation7 + $0x30] ss:$8 sps:$4 sm:$0xff]  }
  0x30   :  { %317 = vmatprep.subr.bf16.mxu0 %v679_v6  ;;  %v702_v32 = vld [vmem:[#allocation5 + $0xd0] ss:$8 sps:$4 sm:$0xff]   ;;  %v736_v33 = vld [vmem:[#allocation7 + $0x24] ss:$8 sps:$4 sm:$0xff]   ;;  %v738_v35 = vld [vmem:[#allocation7 + $0x20] ss:$8 sps:$4 sm:$0xff]  }
  0x31   :  { %534 = vmatpush1.bf16.msra.mxu1 %v726_v19  ;;  %v703_v34 = vld [vmem:[#allocation5 + $0xc4] ss:$8 sps:$4 sm:$0xff]   ;;  %v705_v36 = vld [vmem:[#allocation5 + $0xc0] ss:$8 sps:$4 sm:$0xff]   ;;  %v739_v37 = vld [vmem:[#allocation7 + $0x14] ss:$8 sps:$4 sm:$0xff]  }
  0x32   :  { %535 = vmatprep.subr.bf16.mxu1 %v727_v21  ;;  %v706_v38 = vld [vmem:[#allocation5 + $0xb4] ss:$8 sps:$4 sm:$0xff]   ;;  %v741_v39 = vld [vmem:[#allocation7 + $0x10] ss:$8 sps:$4 sm:$0xff]   ;;  %v742_v41 = vld [vmem:[#allocation7 + $0x4] ss:$8 sps:$4 sm:$0xff]  }
  0x33   :  { %318 = vmatpush1.bf16.msra.mxu0 %v681_v7  ;;  %v708_v40 = vld [vmem:[#allocation5 + $0xb0] ss:$8 sps:$4 sm:$0xff]   ;;  %v709_v42 = vld [vmem:[#allocation5 + $0xa4] ss:$8 sps:$4 sm:$0xff]   ;;  %v744_v43 = vld [vmem:[#allocation7] ss:$8 sps:$4 sm:$0xff]  }
  0x34   :  { %319 = vmatprep.subr.bf16.mxu0 %v682_v8  ;;  %v711_v44 = vld [vmem:[#allocation5 + $0xa0] ss:$8 sps:$4 sm:$0xff]   ;;  %v745_v45 = vld [vmem:[#allocation7 + $0xf4] ss:$8 sps:$4 sm:$0xff]   ;;  %v747_v47 = vld [vmem:[#allocation7 + $0xf0] ss:$8 sps:$4 sm:$0xff]  }
  0x35   :  { %536 = vmatpush1.bf16.msra.mxu1 %v729_v23  ;;  %v712_v46 = vld [vmem:[#allocation5 + $0x94] ss:$8 sps:$4 sm:$0xff]   ;;  %v714_v48 = vld [vmem:[#allocation5 + $0x90] ss:$8 sps:$4 sm:$0xff]   ;;  %v748_v49 = vld [vmem:[#allocation7 + $0xe4] ss:$8 sps:$4 sm:$0xff]  }
  0x36   :  { %537 = vmatprep.subr.bf16.mxu1 %v730_v25  ;;  %v715_v50 = vld [vmem:[#allocation5 + $0x84] ss:$8 sps:$4 sm:$0xff]   ;;  %v750_v51 = vld [vmem:[#allocation7 + $0xe0] ss:$8 sps:$4 sm:$0xff]   ;;  %v751_v53 = vld [vmem:[#allocation7 + $0xd4] ss:$8 sps:$4 sm:$0xff]  }
  0x37   :  { %320 = vmatpush1.bf16.msra.mxu0 %v684_v9  ;;  %v717_v52 = vld [vmem:[#allocation5 + $0x80] ss:$8 sps:$4 sm:$0xff]   ;;  %v718_v54 = vld [vmem:[#allocation2] ss:$8 sps:$4 sm:$0xff]   ;;  %v754_v56 = vld [vmem:[#allocation7 + $0xc4] ss:$8 sps:$4 sm:$0xff]  }
  0x38   :  { %321 = vmatprep.subr.bf16.mxu0 %v685_v10  ;;  %v753_v55 = vld [vmem:[#allocation7 + $0xd0] ss:$8 sps:$4 sm:$0xff]   ;;  %v756_v57 = vld [vmem:[#allocation7 + $0xc0] ss:$8 sps:$4 sm:$0xff]   ;;  %v757_v58 = vld [vmem:[#allocation7 + $0xb4] ss:$8 sps:$4 sm:$0xff]  }
  0x39   :  { %538 = vmatpush1.bf16.msra.mxu1 %v732_v27  ;;  %v759_v59 = vld [vmem:[#allocation7 + $0xb0] ss:$8 sps:$4 sm:$0xff]   ;;  %v760_v60 = vld [vmem:[#allocation7 + $0xa4] ss:$8 sps:$4 sm:$0xff]   ;;  %v762_v61 = vld [vmem:[#allocation7 + $0xa0] ss:$8 sps:$4 sm:$0xff]  }
  0x3a   :  { %539 = vmatprep.subr.bf16.mxu1 %v733_v29  ;;  %v763_v62 = vld [vmem:[#allocation7 + $0x94] ss:$8 sps:$4 sm:$0xff]   ;;  %v765_v63 = vld [vmem:[#allocation7 + $0x90] ss:$8 sps:$4 sm:$0xff]   ;;  %v766_v0 = vld [vmem:[#allocation7 + $0x84] ss:$8 sps:$4 sm:$0xff]  }
  0x3b   :  { %322 = vmatpush1.bf16.msra.mxu0 %v687_v11  ;;  %v768_v1 = vld [vmem:[#allocation7 + $0x80] ss:$8 sps:$4 sm:$0xff]   ;;  %v132_v3 = vshrl.u32 %v131_v2, 7  ;;  %v128_v6 = vld [vmem:[%s913_s2] sm:$0x3]  ;;  %s860_s10 = smov [#allocation8]  }
  0x3c   :  { %323 = vmatprep.subr.bf16.mxu0 %v688_v12  ;;  %v129_v23 = vld [vmem:[%s915_s4] sm:$0x3]  ;;  %s583_s11 = sshll.u32 %s860_s10, 4  ;;  %s584_s11 = int_to_ptr.vmem [resolvable:$true] %s583_s11 }
  0x3d   :  { %540 = vmatpush1.bf16.msra.mxu1 %v735_v31  ;;  %v137_v4 = vsub.s32 1, %v132_v3  ;;  %v133_v5 = vsub.s32 0, %v132_v3  ;;  %s829_s12 = scalar_lea.vmem %s584_s11, 512  ;;  %p834_p2 = scmp.lt.s32.totalorder %s584_s11, %s584_s11 }
  0x3e   :  { %541 = vmatprep.subr.bf16.mxu1 %v736_v33  ;;  %p830_p1 = scmp.ne.s32.totalorder %s584_s11, %s829_s12  ;;  %p835_p3 = scmp.lt.s32.totalorder %s829_s12, %s829_s12 }
  0x3f   :  { %324 = vmatpush1.bf16.msra.mxu0 %v690_v13  ;;  %v138_v8 = vrot.slane %v128_v6, %v137_v4  ;;  %v134_v9 = vrot.slane %v128_v6, %v133_v5  ;;  %v368_v25 = vrot.slane %v129_v23, %v137_v4 }
  0x40   :  { %325 = vmatprep.subr.bf16.mxu0 %v691_v14  ;;  %p836_p4 = por %p835_p3, %p834_p2 }
  0x41   :  { %542 = vmatpush1.bf16.msra.mxu1 %v738_v35 }
  0x42   :  { %543 = vmatprep.subr.bf16.mxu1 %v739_v37  ;;  %p837_p5 = pnand %p836_p4, %p830_p1 }
  0x43   :  { %326 = vmatpush1.bf16.msra.mxu0 %v693_v20 }
  0x44   :  { %327 = vmatprep.subr.bf16.mxu0 %v694_v22 }
  0x45   :  { %544 = vmatpush1.bf16.msra.mxu1 %v741_v39 }
  0x46   :  { %545 = vmatprep.subr.bf16.mxu1 %v742_v41 }
  0x47   :  { %328 = vmatpush2.bf16.msra.mxu0 %v696_v24  ;;  %v364_v24 = vrot.slane %v129_v23, %v133_v5 }
  0x48   :  { %329 = vmatprep.subr.bf16.mxu0 %v697_v26 }
  0x49   :  { %546 = vmatpush1.bf16.msra.mxu1 %v744_v43 }
  0x4a   :  { %547 = vmatprep.subr.bf16.mxu1 %v745_v45 }
  0x4b   :  { %330 = vmatpush2.bf16.msra.mxu0 %v699_v28 }
  0x4c   :  { %331 = vmatprep.subr.bf16.mxu0 %v700_v30 }
  0x4d   :  { %548 = vmatpush2.bf16.msra.mxu1 %v747_v47 }
  0x4e   :  { %549 = vmatprep.subr.bf16.mxu1 %v748_v49 }
  0x4f   :  { %332 = vmatpush2.bf16.msra.mxu0 %v702_v32 }
  0x50   :  { %333 = vmatprep.subr.bf16.mxu0 %v703_v34 }
  0x51   :  { %550 = vmatpush2.bf16.msra.mxu1 %v750_v51 }
  0x52   :  { %551 = vmatprep.subr.bf16.mxu1 %v751_v53 }
  0x53   :  { %334 = vmatpush2.bf16.msra.mxu0 %v705_v36 }
  0x54   :  { %335 = vmatprep.subr.bf16.mxu0 %v706_v38 }
  0x55   :  { %552 = vmatpush2.bf16.msra.mxu1 %v753_v55 }
  0x56   :  { %553 = vmatprep.subr.bf16.mxu1 %v754_v56 }
  0x57   :  { %336 = vmatpush2.bf16.msra.mxu0 %v708_v40 }
  0x58   :  { %337 = vmatprep.subr.bf16.mxu0 %v709_v42 }
  0x59   :  { %554 = vmatpush2.bf16.msra.mxu1 %v756_v57 }
  0x5a   :  { %555 = vmatprep.subr.bf16.mxu1 %v757_v58 }
  0x5b   :  { %338 = vmatpush2.bf16.msra.mxu0 %v711_v44 }
  0x5c   :  { %339 = vmatprep.subr.bf16.mxu0 %v712_v46 }
  0x5d   :  { %556 = vmatpush2.bf16.msra.mxu1 %v759_v59 }
  0x5e   :  { %557 = vmatprep.subr.bf16.mxu1 %v760_v60 }
  0x5f   :  { %340 = vmatpush2.bf16.msra.mxu0 %v714_v48 }
  0x60   :  { %341 = vmatprep.subr.bf16.mxu0 %v715_v50 }
  0x61   :  { %558 = vmatpush2.bf16.msra.mxu1 %v762_v61 }
  0x62   :  { %559 = vmatprep.subr.bf16.mxu1 %v763_v62 }
  0x63   :  { %342 = vmatpush2.bf16.msra.mxu0 %v717_v52 }
  0x65   :  { %560 = vmatpush2.bf16.msra.mxu1 %v765_v63 }
  0x66   :  { %344 = vmatmul.mubr.bf16.vlgmr.msra.gmra.mxu0 %v718_v54  ;;  %561 = vmatprep.subr.bf16.mxu1 %v766_v0 }
  0x69   :  { %562 = vmatpush2.bf16.msra.mxu1 %v768_v1 }
 0x126   :  { %v345_v7 = vpop.f32.mrf.mxu0 }
 0x127   :  { %v346_v14 = vadd.f32 %v345_v7, %v134_v9 }
 0x128   :  { %v347_v10 = vpop.f32.mrf.mxu0 }
 0x129   :  { %v348_v12 = vadd.f32 %v347_v10, %v138_v8  ;;  %v354_v20 = vmax.f32 %v346_v14, 0.0 }
 0x12a   :  { %v349_v11 = vpop.f32.mrf.mxu0 }
 0x12b   :  { %v350_v13 = vadd.f32 %v349_v11, %v134_v9  ;;  %v355_v18 = vmax.f32 %v348_v12, 0.0 }
 0x12c   :  { %v351_v15 = vpop.f32.mrf.mxu0 }
 0x12d   :  { %v352_v16 = vadd.f32 %v351_v15, %v138_v8  ;;  %v356_v17 = vmax.f32 %v350_v13, 0.0 }
 0x12f   :  { %v357_v19 = vmax.f32 %v352_v16, 0.0  ;;  %v358_v22 = vpack.c.bf16 %v356_v17, %v354_v20 }
 0x131   :  { %v359_v21 = vpack.c.bf16 %v357_v19, %v355_v18 }
 0x133   :  { %563 = vmatprep.mubr.bf16.mxu1 %v359_v21 }
 0x134   :  { %564 = vmatmul.mubr.bf16.vlgmr.msra.gmra.mxu1 %v358_v22 }
 0x1f4   :  { %v565_v26 = vpop.f32.mrf.mxu1 }
 0x1f5   :  { %v566_v27 = vadd.f32 %v565_v26, %v364_v24 }
 0x1f6   :  { %v567_v28 = vpop.f32.mrf.mxu1 }
 0x1f7   :  { %574 = vst [vmem:[#allocation8] sm:$0xff] %v566_v27  ;;  %v568_v29 = vadd.f32 %v567_v28, %v368_v25 }
 0x1f8   :  { %v569_v30 = vpop.f32.mrf.mxu1 }
 0x1f9   :  { %575 = vst [vmem:[#allocation8 + $0x8] sm:$0xff] %v568_v29  ;;  %v570_v31 = vadd.f32 %v569_v30, %v364_v24 }
 0x1fa   :  { %v571_v32 = vpop.f32.mrf.mxu1 }
 0x1fb   :  { %576 = vst [vmem:[#allocation8 + $0x10] sm:$0xff] %v570_v31  ;;  %v572_v33 = vadd.f32 %v571_v32, %v368_v25 }
 0x1fd   :  { %577 = vst [vmem:[#allocation8 + $0x18] sm:$0xff] %v572_v33 }
 0x1fe   :  { %840 = shalt.err (!%p837_p5)
}
 0x1ff   :  { %s861_s4 = smov 256   ;;  %s862_s13 = smov 16  }
 0x200   :  { %589 = dma.vmem_to_hbm [thread:$0]  %s584_s11, 512, %s916_s5, [#allocation4], %s861_s4, %s861_s4, %s862_s13  }
 0x201   :  { %853 = dma.done.wait [#allocation4], 512  }
 0x202   :  { %854 = vsyncadd [#allocation4], 4294966784 }
 0x203   :  { %593 = vsyncpa [#allocation3], 1 }
 0x204   :  { %594 = vsyncpa [#allocation6], 1 }
 0x205   :  { %595 = vsyncpa [#allocation4], 1 }

</bundles_post_ra>
